<compile_context>
chip_gen: v7x
topology: tpu7x:2x2x1
jax: 0.10.0
libtpu: 0.0.40
codegen_flags: <defaults>
</compile_context>

<pallas_src>
import functools

import jax
import jax.numpy as jnp
from jax.experimental import pallas as pl
from jax.experimental.pallas import tpu as pltpu


def _sepconv_kernel(x_ref, halo_ref, wdw_ref, wpw_ref, o_ref, *,
                    ks, dilation, tile_h, w_out, c_in, c_out, compute_dtype):
    """One (batch, H-tile) grid cell.

    x_ref    : (tile_h, Wp*C_in)           main rows, W*C flattened on lanes
    halo_ref : (halo,   Wp*C_in)           bottom halo rows for this tile
    wdw_ref  : (ks*ks,  Wo*C_in)           depthwise taps, tiled across W on lanes
    wpw_ref  : (Wo*C_in, Wo*C_out)         block-diagonal pointwise weight
    o_ref    : (tile_h, Wo*C_out)          lane-dense output slab
    """
    # tile_h main rows + small bottom halo -> (tile_h + halo, Wp*C_in).
    xb = jnp.concatenate([x_ref[...], halo_ref[...]], axis=0)
    wdw = wdw_ref[...].astype(jnp.float32)

    # Depthwise conv: ks*ks VPU FMAs on contiguous, full-width lane slices
    # (no lane concat, no im2col).  Accumulate in f32.
    dw = jnp.zeros((tile_h, w_out * c_in), jnp.float32)
    for t in range(ks * ks):
        kh, kw = divmod(t, ks)
        tap = xb[kh * dilation: kh * dilation + tile_h,
                 kw * dilation * c_in: kw * dilation * c_in + w_out * c_in]
        dw = dw + tap.astype(jnp.float32) * wdw[t:t + 1, :]

    # Pointwise 1x1 conv: one MXU matmul against the block-diagonal weight.
    # The result is already the (tile_h, Wo*C_out) lane-dense slab -> no reshape.
    y = jnp.dot(dw.astype(compute_dtype), wpw_ref[...],
                preferred_element_type=jnp.float32)
    o_ref[...] = y.astype(o_ref.dtype)


def _separable_conv2d_stride1_nhwc(x_nhwc, w_dw, w_pw, *, padding, dilation,
                                   compute_dtype, tile_h_max, out_dtype):
    """stride=1 SeparableConv2d on an NHWC input; returns NHWC output."""
    n, h, w, c_in = x_nhwc.shape
    ks = w_dw.shape[-1]
    c_out = w_pw.shape[0]
    cdt = jnp.dtype(compute_dtype)

    hp, wp = h + 2 * padding, w + 2 * padding
    h_out = hp - dilation * (ks - 1)
    w_out = wp - dilation * (ks - 1)
    assert h_out > 0 and w_out > 0, "kernel/dilation larger than padded input"

    wpc = wp * c_in            # flattened input lane width
    wic = w_out * c_in         # matmul K  (lane width of the dw accumulator)
    woc = w_out * c_out        # matmul N  (lane width of the output slab)
    isz = jnp.dtype(cdt).itemsize
    osz = jnp.dtype(out_dtype).itemsize

    # Small-channel fast-path guard (block-diag pw weight must stay small).
    bd_bytes = wic * woc * isz
    if c_in > 16 or bd_bytes > (8 << 20):
        # TODO(synk): large-channel / very wide variant not implemented here.
        raise NotImplementedError(
            "Pallas SeparableConv2d path is tuned for small C_in / moderate W.")

    # --- VMEM budget from hardware info (no hard 64 MiB clamp). -------------
    try:
        vmem_cap = int(pltpu.get_tpu_info().vmem_capacity_bytes)
    except Exception:
        vmem_cap = 64 << 20
    vmem_budget = int(vmem_cap * 0.85)

    sub_q = 16 if jnp.dtype(cdt) == jnp.dtype(jnp.bfloat16) else 8
    halo_rows = max((ks - 1) * dilation, 1)

    def step_bytes(t):
        blocks = 2 * (t * wpc * isz + halo_rows * wpc * isz + t * woc * osz)
        blocks += 2 * (ks * ks * wic + wic * woc) * isz
        live = ((t + halo_rows) * wpc * isz          # xb copy
                + 2 * t * wic * 4                    # dw acc + tap temp
                + t * woc * 4)                       # matmul result
        return int((blocks + live) * 1.25)

    # Largest tile_h (multiple of the sublane quantum) that fits the budget.
    h_out_pad_max = pl.cdiv(h_out, sub_q) * sub_q
    tile_h, t = sub_q, sub_q
    while t <= h_out_pad_max:
        if step_bytes(t) <= vmem_budget:
            tile_h = t
        t += sub_q
    if tile_h_max is not None:
        tile_h = min(tile_h, max(sub_q, (tile_h_max // sub_q) * sub_q))
    n_h = pl.cdiv(h_out, tile_h)
    h_out_pad = n_h * tile_h

    # --- Wrapper-side layout prep (plain JAX glue). --------------------------
    hp2 = max(hp, h_out_pad + halo_rows)
    x_p = jnp.pad(x_nhwc.astype(cdt),
                  ((0, 0), (padding, padding + (hp2 - hp)),
                   (padding, padding), (0, 0)))
    x_flat = x_p.reshape(n, hp2, wpc)                      # free reshape (row-major)

    # Bottom halo strip for each H tile: rows [(j+1)*tile_h, (j+1)*tile_h + halo).
    starts = (jnp.arange(n_h) + 1) * tile_h
    ridx = starts[:, None] + jnp.arange(halo_rows)[None, :]
    halo = x_flat[:, ridx, :]                              # (n, n_h, halo, wpc)

    # Depthwise taps tiled across W on lanes: wdw_taps[t, wo*C_in + c] = wdw[c, kh, kw].
    wdw_taps = jnp.transpose(w_dw[:, 0, :, :], (1, 2, 0)).reshape(ks * ks, c_in)
    wdw_taps = jnp.tile(wdw_taps.astype(jnp.float32), (1, w_out)).astype(cdt)

    # Block-diagonal pointwise weight: kron(I_Wo, Wpw)  ->  (Wo*C_in, Wo*C_out).
    wpw_mat = jnp.transpose(w_pw[:, :, 0, 0], (1, 0)).astype(jnp.float32)
    wpw_bd = jnp.kron(jnp.eye(w_out, dtype=jnp.float32), wpw_mat).astype(cdt)

    kernel = functools.partial(
        _sepconv_kernel, ks=ks, dilation=dilation, tile_h=tile_h,
        w_out=w_out, c_in=c_in, c_out=c_out, compute_dtype=cdt)

    out_slab = pl.pallas_call(
        kernel,
        out_shape=jax.ShapeDtypeStruct((n, h_out_pad, woc), out_dtype),
        grid=(n, n_h),
        in_specs=[
            # tile_h main rows per step (VMEM scales with tile_h, not the image).
            pl.BlockSpec((None, tile_h, wpc), lambda i, j: (i, j, 0)),
            # per-tile bottom halo strip (full extent on its last two dims).
            pl.BlockSpec((None, None, halo_rows, wpc), lambda i, j: (i, j, 0, 0)),
            # tiny constant weights (block index never changes -> fetched once).
            pl.BlockSpec((ks * ks, wic), lambda i, j: (0, 0)),
            pl.BlockSpec((wic, woc), lambda i, j: (0, 0)),
        ],
        out_specs=pl.BlockSpec((None, tile_h, woc), lambda i, j: (i, j, 0)),
        compiler_params=pltpu.CompilerParams(
            dimension_semantics=("parallel", "parallel"),
            vmem_limit_bytes=vmem_budget),
    )(x_flat, halo, wdw_taps, wpw_bd)

    out = out_slab[:, :h_out, :].reshape(n, h_out, w_out, c_out)
    return out


def separable_conv2d(x, w_dw, w_pw, *, stride=1, padding=0, dilation=1,
                     compute_dtype=None, tile_h_max=None, layout="NCHW"):
    """Pallas implementation of SeparableConv2d.forward (bias=False).

    x      : (N, C_in, H, W) if layout=="NCHW", else (N, H, W, C_in)
    w_dw   : (C_in, 1, ks, ks)   torch depthwise weight
    w_pw   : (C_out, C_in, 1, 1) torch pointwise weight
    compute_dtype: optional MXU/VPU operand dtype (e.g. jnp.bfloat16 on v6e/v7x;
                   changes rounding vs. the f32 reference).
    """
    if layout == "NCHW":
        x_nhwc = jnp.transpose(x, (0, 2, 3, 1))
    elif layout == "NHWC":
        x_nhwc = x
    else:
        raise ValueError(f"unknown layout {layout!r}")

    cdt = compute_dtype if compute_dtype is not None else x.dtype
    out = _separable_conv2d_stride1_nhwc(
        x_nhwc, w_dw, w_pw, padding=padding, dilation=dilation,
        compute_dtype=cdt, tile_h_max=tile_h_max, out_dtype=x.dtype)

    if stride > 1:
        # Strided conv == subsample of the stride-1 conv with the same padding.
        # TODO(synk): replace with a wrapper space-to-depth repack to avoid the
        # redundant stride-1 compute.
        out = out[:, ::stride, ::stride, :]

    if layout == "NCHW":
        out = jnp.transpose(out, (0, 3, 1, 2))
    return out


def _reference(x, w_dw, w_pw, stride, padding, dilation):
    """Pure-JAX reference matching torch Conv2d semantics (bias=False)."""
    y = jax.lax.conv_general_dilated(
        x, w_dw, (stride, stride),
        ((padding, padding), (padding, padding)),
        rhs_dilation=(dilation, dilation),
        dimension_numbers=("NCHW", "OIHW", "NCHW"),
        feature_group_count=x.shape[1])
    y = jax.lax.conv_general_dilated(
        y, w_pw, (1, 1), "VALID",
        dimension_numbers=("NCHW", "OIHW", "NCHW"))
    return y


if __name__ == "__main__":
    # SeparableConv2d(c_in=4, c_out=8, ks=3, bias=False)
    N, C_IN, C_OUT, H, W, KS = 2, 4, 8, 16, 16, 3

    key = jax.random.PRNGKey(0)
    kx, kd, kp = jax.random.split(key, 3)
    x = jax.random.normal(kx, (N, C_IN, H, W), dtype=jnp.float32)
    w_dw = jax.random.normal(kd, (C_IN, 1, KS, KS), dtype=jnp.float32) * 0.1
    w_pw = jax.random.normal(kp, (C_OUT, C_IN, 1, 1), dtype=jnp.float32) * 0.1

    cases = [
        dict(stride=1, padding=1, dilation=1, tile_h_max=None),  # single H tile
        dict(stride=1, padding=1, dilation=1, tile_h_max=8),     # 2 H tiles (halo path)
        dict(stride=1, padding=2, dilation=2, tile_h_max=None),  # dilated taps
        dict(stride=2, padding=1, dilation=1, tile_h_max=None),  # strided (subsample)
    ]
    for cfg in cases:
        out = separable_conv2d(x, w_dw, w_pw, stride=cfg["stride"],
                               padding=cfg["padding"], dilation=cfg["dilation"],
                               tile_h_max=cfg["tile_h_max"])
        out = jax.block_until_ready(out)
        ref = jax.block_until_ready(
            _reference(x, w_dw, w_pw, cfg["stride"], cfg["padding"], cfg["dilation"]))
        assert out.shape == ref.shape, (cfg, out.shape, ref.shape)
        err = float(jnp.max(jnp.abs(out - ref)))
        assert err < 1e-4, (cfg, err)

    print("KERNEL_OK")
</pallas_src>

<mosaic_0001>
module attributes {stable_mosaic.version = 11 : i64} {
  func.func @_sepconv_kernel(%arg0: i32, %arg1: i32, %arg2: memref<1x16x72xf32, #tpu.memory_space<vmem>>, %arg3: memref<1x1x2x72xf32, #tpu.memory_space<vmem>>, %arg4: memref<9x64xf32, #tpu.memory_space<vmem>>, %arg5: memref<64x128xf32, #tpu.memory_space<vmem>>, %arg6: memref<1x16x128xf32, #tpu.memory_space<vmem>>) attributes {dimension_semantics = [#tpu.dimension_semantics<parallel>, #tpu.dimension_semantics<parallel>], iteration_bounds = array<i64: 2, 1>, scalar_prefetch = 0 : i64, scratch_operands = 0 : i64, tpu.core_type = #tpu.core_type<tc>, window_params = [{transform_indices = @transform_0, window_bounds = array<i64: 1, 16, 72>}, {transform_indices = @transform_1, window_bounds = array<i64: 1, 1, 2, 72>}, {pipeline_mode = #tpu.pipeline_mode<synchronous>, transform_indices = @transform_2, window_bounds = array<i64: 9, 64>}, {pipeline_mode = #tpu.pipeline_mode<synchronous>, transform_indices = @transform_3, window_bounds = array<i64: 64, 128>}, {transform_indices = @transform_4, window_bounds = array<i64: 1, 16, 128>}]} {
    %c0 = arith.constant 0 : index
    %c0_0 = arith.constant 0 : index
    %c0_1 = arith.constant 0 : index
    %0 = vector.load %arg2[%c0, %c0_0, %c0_1] : memref<1x16x72xf32, #tpu.memory_space<vmem>>, vector<1x16x72xf32>
    %1 = vector.shape_cast %0 : vector<1x16x72xf32> to vector<16x72xf32>
    %c0_2 = arith.constant 0 : index
    %c0_3 = arith.constant 0 : index
    %c0_4 = arith.constant 0 : index
    %c0_5 = arith.constant 0 : index
    %2 = vector.load %arg3[%c0_2, %c0_3, %c0_4, %c0_5] : memref<1x1x2x72xf32, #tpu.memory_space<vmem>>, vector<1x1x2x72xf32>
    %3 = vector.shape_cast %2 : vector<1x1x2x72xf32> to vector<2x72xf32>
    %4 = tpu.concatenate %1, %3 in 0 : vector<16x72xf32>, vector<2x72xf32> -> vector<18x72xf32>
    %c0_6 = arith.constant 0 : index
    %c0_7 = arith.constant 0 : index
    %5 = vector.load %arg4[%c0_6, %c0_7] : memref<9x64xf32, #tpu.memory_space<vmem>>, vector<9x64xf32>
    %cst = arith.constant 0.000000e+00 : f32
    %6 = vector.broadcast %cst : f32 to vector<16x64xf32>
    %7 = vector.extract_strided_slice %4 {offsets = [0, 0], sizes = [16, 64], strides = [1, 1]} : vector<18x72xf32> to vector<16x64xf32>
    %8 = vector.extract_strided_slice %5 {offsets = [0, 0], sizes = [1, 64], strides = [1, 1]} : vector<9x64xf32> to vector<1x64xf32>
    %9 = vector.broadcast %8 : vector<1x64xf32> to vector<16x64xf32>
    %10 = arith.mulf %7, %9 : vector<16x64xf32>
    %11 = arith.addf %6, %10 : vector<16x64xf32>
    %12 = vector.extract_strided_slice %4 {offsets = [0, 4], sizes = [16, 64], strides = [1, 1]} : vector<18x72xf32> to vector<16x64xf32>
    %13 = vector.extract_strided_slice %5 {offsets = [1, 0], sizes = [1, 64], strides = [1, 1]} : vector<9x64xf32> to vector<1x64xf32>
    %14 = vector.broadcast %13 : vector<1x64xf32> to vector<16x64xf32>
    %15 = arith.mulf %12, %14 : vector<16x64xf32>
    %16 = arith.addf %11, %15 : vector<16x64xf32>
    %17 = vector.extract_strided_slice %4 {offsets = [0, 8], sizes = [16, 64], strides = [1, 1]} : vector<18x72xf32> to vector<16x64xf32>
    %18 = vector.extract_strided_slice %5 {offsets = [2, 0], sizes = [1, 64], strides = [1, 1]} : vector<9x64xf32> to vector<1x64xf32>
    %19 = vector.broadcast %18 : vector<1x64xf32> to vector<16x64xf32>
    %20 = arith.mulf %17, %19 : vector<16x64xf32>
    %21 = arith.addf %16, %20 : vector<16x64xf32>
    %22 = vector.extract_strided_slice %4 {offsets = [1, 0], sizes = [16, 64], strides = [1, 1]} : vector<18x72xf32> to vector<16x64xf32>
    %23 = vector.extract_strided_slice %5 {offsets = [3, 0], sizes = [1, 64], strides = [1, 1]} : vector<9x64xf32> to vector<1x64xf32>
    %24 = vector.broadcast %23 : vector<1x64xf32> to vector<16x64xf32>
    %25 = arith.mulf %22, %24 : vector<16x64xf32>
    %26 = arith.addf %21, %25 : vector<16x64xf32>
    %27 = vector.extract_strided_slice %4 {offsets = [1, 4], sizes = [16, 64], strides = [1, 1]} : vector<18x72xf32> to vector<16x64xf32>
    %28 = vector.extract_strided_slice %5 {offsets = [4, 0], sizes = [1, 64], strides = [1, 1]} : vector<9x64xf32> to vector<1x64xf32>
    %29 = vector.broadcast %28 : vector<1x64xf32> to vector<16x64xf32>
    %30 = arith.mulf %27, %29 : vector<16x64xf32>
    %31 = arith.addf %26, %30 : vector<16x64xf32>
    %32 = vector.extract_strided_slice %4 {offsets = [1, 8], sizes = [16, 64], strides = [1, 1]} : vector<18x72xf32> to vector<16x64xf32>
    %33 = vector.extract_strided_slice %5 {offsets = [5, 0], sizes = [1, 64], strides = [1, 1]} : vector<9x64xf32> to vector<1x64xf32>
    %34 = vector.broadcast %33 : vector<1x64xf32> to vector<16x64xf32>
    %35 = arith.mulf %32, %34 : vector<16x64xf32>
    %36 = arith.addf %31, %35 : vector<16x64xf32>
    %37 = vector.extract_strided_slice %4 {offsets = [2, 0], sizes = [16, 64], strides = [1, 1]} : vector<18x72xf32> to vector<16x64xf32>
    %38 = vector.extract_strided_slice %5 {offsets = [6, 0], sizes = [1, 64], strides = [1, 1]} : vector<9x64xf32> to vector<1x64xf32>
    %39 = vector.broadcast %38 : vector<1x64xf32> to vector<16x64xf32>
    %40 = arith.mulf %37, %39 : vector<16x64xf32>
    %41 = arith.addf %36, %40 : vector<16x64xf32>
    %42 = vector.extract_strided_slice %4 {offsets = [2, 4], sizes = [16, 64], strides = [1, 1]} : vector<18x72xf32> to vector<16x64xf32>
    %43 = vector.extract_strided_slice %5 {offsets = [7, 0], sizes = [1, 64], strides = [1, 1]} : vector<9x64xf32> to vector<1x64xf32>
    %44 = vector.broadcast %43 : vector<1x64xf32> to vector<16x64xf32>
    %45 = arith.mulf %42, %44 : vector<16x64xf32>
    %46 = arith.addf %41, %45 : vector<16x64xf32>
    %47 = vector.extract_strided_slice %4 {offsets = [2, 8], sizes = [16, 64], strides = [1, 1]} : vector<18x72xf32> to vector<16x64xf32>
    %48 = vector.extract_strided_slice %5 {offsets = [8, 0], sizes = [1, 64], strides = [1, 1]} : vector<9x64xf32> to vector<1x64xf32>
    %49 = vector.broadcast %48 : vector<1x64xf32> to vector<16x64xf32>
    %50 = arith.mulf %47, %49 : vector<16x64xf32>
    %51 = arith.addf %46, %50 : vector<16x64xf32>
    %c0_8 = arith.constant 0 : index
    %c0_9 = arith.constant 0 : index
    %52 = vector.load %arg5[%c0_8, %c0_9] : memref<64x128xf32, #tpu.memory_space<vmem>>, vector<64x128xf32>
    %cst_10 = arith.constant dense<0.000000e+00> : vector<16x128xf32>
    %53 = tpu.matmul %51, %52, %cst_10 {dimension_numbers = #tpu.dot_dimension_numbers<[1], [0], [0], [1], [0, 0, 1, 1], [], []>} : vector<16x64xf32>, vector<64x128xf32>, vector<16x128xf32> -> vector<16x128xf32>
    %c0_11 = arith.constant 0 : index
    %c0_12 = arith.constant 0 : index
    %c0_13 = arith.constant 0 : index
    %54 = vector.load %arg6[%c0_11, %c0_12, %c0_13] : memref<1x16x128xf32, #tpu.memory_space<vmem>>, vector<1x16x128xf32>
    %55 = vector.shape_cast %54 : vector<1x16x128xf32> to vector<16x128xf32>
    %56 = vector.shape_cast %53 : vector<16x128xf32> to vector<1x16x128xf32>
    tpu.vector_store %arg6[%c0_11, %c0_12, %c0_13], %56 {strides = array<i32>} : memref<1x16x128xf32, #tpu.memory_space<vmem>>, vector<1x16x128xf32>,
    return
  }
  func.func @transform_0(%arg0: i32, %arg1: i32) -> (i32, i32, i32) {
    %c0_i32 = arith.constant 0 : i32
    %c0_i32_0 = arith.constant 0 : i32
    return %arg0, %arg1, %c0_i32 : i32, i32, i32
  }
  func.func @transform_1(%arg0: i32, %arg1: i32) -> (i32, i32, i32, i32) {
    %c0_i32 = arith.constant 0 : i32
    %c0_i32_0 = arith.constant 0 : i32
    %c0_i32_1 = arith.constant 0 : i32
    return %arg0, %arg1, %c0_i32, %c0_i32_0 : i32, i32, i32, i32
  }
  func.func @transform_2(%arg0: i32, %arg1: i32) -> (i32, i32) {
    %c0_i32 = arith.constant 0 : i32
    %c0_i32_0 = arith.constant 0 : i32
    %c0_i32_1 = arith.constant 0 : i32
    return %c0_i32, %c0_i32_0 : i32, i32
  }
  func.func @transform_3(%arg0: i32, %arg1: i32) -> (i32, i32) {
    %c0_i32 = arith.constant 0 : i32
    %c0_i32_0 = arith.constant 0 : i32
    %c0_i32_1 = arith.constant 0 : i32
    return %c0_i32, %c0_i32_0 : i32, i32
  }
  func.func @transform_4(%arg0: i32, %arg1: i32) -> (i32, i32, i32) {
    %c0_i32 = arith.constant 0 : i32
    %c0_i32_0 = arith.constant 0 : i32
    return %arg0, %arg1, %c0_i32 : i32, i32, i32
  }
}

</mosaic_0001>

<bundles_post_ra>
// kernel: tpu_custom_call.1
= control target key start
LH: loop header
LB: loop body
LE: loop exit
PB: predicated region body
PF: predicated region fallthrough
CT: control target
= control target key end

     0   :  { %9 = vsyncpa [#allocation3], 0  ;;  %s1150_s0 = inlined_call_operand.vmem [shape: f32[2,18,72], index: 0, kind: input, shape index: {}]   ;;  %s1151_s1 = inlined_call_operand.vmem [shape: f32[2,1,2,72], index: 1, kind: input, shape index: {}]   ;;  %s1152_s2 = inlined_call_operand.vmem [shape: f32[9,64], index: 2, kind: input, shape index: {}]   ;;  %s1153_s3 = inlined_call_operand.vmem [shape: f32[64,128], index: 3, kind: input, shape index: {}]   ;;  %s1154_s4 = inlined_call_operand.hbm [shape: f32[2,16,128], index: 4, kind: output, shape index: {}]  }
   0x1   :  { %11 = vsyncpa [#allocation3 + $0x1], 0  ;;  %s912_s15 = smov 0   ;;  %s914_s16 = smov 0  }
   0x2   :  { %s916_s17 = smov 0   ;;  %s918_s18 = smov 0  }
   0x3   :  { %s920_s19 = smov 0   ;;  %s922_s20 = smov 0  }
   0x4 LB: > { %s678_s21 = sadd.s32 4294967295, %s879_s20   ;;  %s679_s22 = sadd.s32 4294967294, %s879_s20   ;;  %s879_s20 = sphi %s922_s20, %s17_s20   ;;  %s875_s19 = sphi %s920_s19, %s1161_s19   ;;  %s871_s18 = sphi %s918_s18, %s1160_s18   ;;  %s867_s17 = sphi %s916_s17, %s1159_s17   ;;  %s863_s16 = sphi %s914_s16, %s1158_s16   ;;  %s859_s15 = sphi %s912_s15, %s1157_s15  }
   0x5   : > { %s29_s23 = sadd.s32 1, %s875_s19  ;;  %s136_s24 = sadd.s32 1, %s867_s17 }
   0x6   : > { %p31_p0 = scmp.ge.s32.totalorder %s29_s23, 2  ;;  %p146_p1 = scmp.ne.s32.totalorder %s867_s17, %s863_s16 }
   0x7   : > { %p147_p2 = scmp.eq.s32.totalorder %s678_s21, 1  ;;  %p152_p3 = scmp.ne.s32.totalorder %s863_s16, %s859_s15 }
   0x8   : > { %s1163_s23 = smov (%p31_p0, %s29_s23), 0  ;;  %p153_p5 = scmp.eq.s32.totalorder %s679_s22, 1 }
   0x9   : > { %p952_p4 = por %p147_p2, %p146_p1  ;;  %s131_s26 = ssub.s32 %s875_s19, %s1163_s23 }
   0xa   : > { %p682_p6 = scmp.ge.s32.totalorder %s879_s20, 1  ;;  %p134_p7 = scmp.eq.s32.totalorder %s131_s26, 0 }
   0xb   : > { %p959_p8 = por %p153_p5, %p152_p3  ;;  %p208_p9 = scmp.lt.s32.totalorder %s879_s20, 3 }
   0xc   : > { %s965_s28 = scalar_select %p134_p7, %s867_s17, %s136_s24  }
   0xd   : > { %p209_p10 = pnand %p682_p6, %p208_p9 }
   0xe   : > { %v280_v0 = vlaneseq (!%p209_p10)  ;;  %v972_v2 = vld [vmem:[%s1152_s2] sm:$0xff] (!%p209_p10)  ;;  %s881_s5 = smov (!%p209_p10), 4   ;;  %s882_s6 = smov (!%p209_p10), 8   ;;  %v686_v13 = vld [vmem:[%s1152_s2 + $0x8] ss:$0 sm:$0xff] (!%p209_p10)  ;;  %vm338_vm0 = vcmask (!%p209_p10), 1046528  }
   0xf   : > { %212 = sbr.rel (%p209_p10) target bundleno = 505 (0x1f9), region = 36  ;;  %p254_p11 = scmp.lt.s32.totalorder (!%p209_p10), %s871_s18, 1  ;;  %v476_v25 = vld [vmem:[%s1153_s3] sm:$0xff] (!%p209_p10)  ;;  %v477_v26 = vld [vmem:[%s1153_s3 + $0x8] sm:$0xff] (!%p209_p10)  ;;  %v478_v32 = vld [vmem:[%s1153_s3 + $0x10] sm:$0xff] (!%p209_p10)  ;;  %vm412_vm1 = vcmask (!%p209_p10), 1045504  }
  0x10   : > { %v967_v1 = vshrl.u32 (!%p209_p10), %v280_v0, 7  ;;  %v724_v27 = vpack.c.bf16 (!%p209_p10), %v477_v26, %v476_v25  ;;  %v479_v33 = vld [vmem:[%s1153_s3 + $0x18] sm:$0xff] (!%p209_p10)  ;;  %v480_v45 = vld [vmem:[%s1153_s3 + $0x20] sm:$0xff] (!%p209_p10)  ;;  %v481_v46 = vld [vmem:[%s1153_s3 + $0x28] sm:$0xff] (!%p209_p10)  ;;  %s883_s21 = smov (!%p209_p10), 124   ;;  %s884_s30 = smov (!%p209_p10), 120  }
  0x11   : > { %v728_v34 = vpack.c.bf16 (!%p209_p10), %v479_v33, %v478_v32  ;;  %v732_v51 = vpack.c.bf16 (!%p209_p10), %v481_v46, %v480_v45  ;;  %v482_v63 = vld [vmem:[%s1153_s3 + $0x30] sm:$0xff] (!%p209_p10)  ;;  %v483_v0 = vld [vmem:[%s1153_s3 + $0x38] sm:$0xff] (!%p209_p10)  ;;  %vm484_vm2 = vcmask (!%p209_p10), 523264  }
  0x12   : > { %v290_v3 = vsub.s32 (!%p209_p10), 1, %v967_v1  ;;  %v310_v4 = vsub.s32 (!%p209_p10), 2, %v967_v1  ;;  %v350_v5 = vsub.s32 (!%p209_p10), 4, %v967_v1  ;;  %v377_v6 = vsub.s32 (!%p209_p10), 5, %v967_v1  ;;  %725 = vmatprep.subr.bf16.mxu0 (!%p209_p10), %v724_v27 }
  0x13   : > { %v424_v11 = vsub.s32 (!%p209_p10), 7, %v967_v1  ;;  %v330_v14 = vsub.s32 (!%p209_p10), 3, %v967_v1  ;;  %v404_v30 = vsub.s32 (!%p209_p10), 6, %v967_v1  ;;  %727 = vmatpush3.bf16.msra.mxu0 (!%p209_p10), %v724_v27 }
  0x14   : > { %v291_v7 = vrot.slane (!%p209_p10), %v972_v2, %v290_v3  ;;  %v351_v8 = vrot.slane (!%p209_p10), %v972_v2, %v350_v5  ;;  %v311_v9 = vrot.slane (!%p209_p10), %v972_v2, %v310_v4  ;;  %v378_v10 = vrot.slane (!%p209_p10), %v972_v2, %v377_v6  ;;  %729 = vmatprep.subr.bf16.mxu0 (!%p209_p10), %v728_v34 }
  0x15   : > { %v425_v12 = vrot.slane (!%p209_p10), %v972_v2, %v424_v11  ;;  %v331_v15 = vrot.slane (!%p209_p10), %v972_v2, %v330_v14  ;;  %v405_v31 = vrot.slane (!%p209_p10), %v972_v2, %v404_v30  ;;  %v736_v5 = vpack.c.bf16 (!%p209_p10), %v483_v0, %v482_v63 }
  0x16   : > { %293 = vrot.lane.b32.xlu0 %v291_v7, %s881_s5  ;;  %353 = vrot.lane.b32.xlu1 %v351_v8, %s881_s5  ;;  %s255_s9 = scalar_select %p254_p11, %s871_s18, 1 }
  0x17   : > { %731 = vmatpush3.bf16.msra.mxu0 %v728_v34 }
  0x18   : > { %s740_s10 = smul.u32 24, %s255_s9  ;;  %s685_s11 = sshll.u32 %s255_s9, 1  ;;  %733 = vmatprep.subr.bf16.mxu0 %v732_v51 }
  0x19   : > { %s273_s24 = scalar_lea.vmem %s1151_s1, %s685_s11 }
  0x1a   : > { %313 = vrot.lane.b32.xlu0 %v311_v9, %s882_s6  ;;  %380 = vrot.lane.b32.xlu1 %v378_v10, %s882_s6  ;;  %s261_s14 = scalar_lea.vmem %s1150_s0, %s740_s10  ;;  %v1004_v18 = vld [vmem:[%s273_s24] sm:$0x3]  ;;  %s694_s10 = sshll.u32 %s871_s18, 8 }
  0x1b   : > { %v1000_v16 = vld [vmem:[%s261_s14] sm:$0xff]  ;;  %v1002_v17 = vld [vmem:[%s261_s14 + $0x8] sm:$0xff]  ;;  %v334_v20 = vmul.f32 %v331_v15, %v1004_v18  ;;  %v408_v36 = vmul.f32 %v405_v31, %v1004_v18  ;;  %735 = vmatpush3.bf16.msra.mxu0 %v732_v51  ;;  %s1101_s13 = scalar_lea.hbm %s1154_s4, %s694_s10  ;;  %s885_s18 = smov [#allocation2]  }
  0x1c   : > { %v333_v19 = vmul.f32 %v331_v15, %v1002_v17  ;;  %v332_v21 = vmul.f32 %v331_v15, %v1000_v16  ;;  %v407_v35 = vmul.f32 %v405_v31, %v1002_v17  ;;  %v406_v37 = vmul.f32 %v405_v31, %v1000_v16  ;;  %737 = vmatprep.subr.bf16.mxu0 %v736_v5  ;;  %s805_s22 = sshll.u32 %s885_s18, 4  ;;  %s806_s22 = int_to_ptr.vmem [resolvable:$false] %s805_s22 }
  0x1d   : > { %v342_v23 = vrot.slane %v334_v20, 1  ;;  %v416_v48 = vrot.slane %v408_v36, 2  ;;  %s807_s24 = scalar_lea.vmem %s806_s22, 512 }
  0x1e   : > { %427 = vrot.lane.b32.xlu0 %v425_v12, %s881_s5  ;;  %454 = vrot.lane.b32.xlu1 %v686_v13, %s882_s6  ;;  %v340_v22 = vrot.slane %v333_v19, 1  ;;  %v339_v24 = vrot.slane %v332_v21, 1  ;;  %v414_v47 = vrot.slane %v407_v35, 2  ;;  %v413_v49 = vrot.slane %v406_v37, 2  ;;  %s246_s5 = sand.u32 1, %s863_s16  }
  0x1f   : > { %739 = vmatpush3.bf16.msra.mxu0 %v736_v5  ;;  %s683_s7 = sshll.u32 %s246_s5, 4  ;;  %s1103_s14 = scalar_lea.sflag [#allocation3], %s246_s5 }
  0x20   : > { %v1016_v28 = vsel %vm338_vm0, %v340_v22, %v342_v23  ;;  %v1019_v29 = vsel %vm338_vm0, %v339_v24, %v340_v22  ;;  %v1046_v56 = vsel %vm412_vm1, %v414_v47, %v416_v48  ;;  %v1049_v57 = vsel %vm412_vm1, %v413_v49, %v414_v47  ;;  %s248_s8 = scalar_lea.vmem [#allocation2], %s683_s7 }
  0x21   : > { %s584_s9 = sshll.u32 %s248_s8, 4  ;;  %s1096_s9 = int_to_ptr.vmem [resolvable:$true] %s584_s9 }
  0x22   : > { %p808_p1 = scmp.lt.s32.totalorder %s1096_s9, %s806_s22 }
  0x88   : > { %v294_v38 = vpop.permute.xlu0 %293  ;;  %v354_v39 = vpop.permute.xlu1 %353 }
  0x89   : > { %v296_v40 = vmul.f32 %v294_v38, %v1000_v16  ;;  %v297_v41 = vmul.f32 %v294_v38, %v1002_v17  ;;  %v356_v42 = vmul.f32 %v354_v39, %v1000_v16  ;;  %v357_v43 = vmul.f32 %v354_v39, %v1002_v17 }
  0x8a   : > { %v358_v44 = vmul.f32 %v354_v39, %v1004_v18 }
  0x8b   : > { %302 = vrot.lane.b32.xlu1 %v297_v41, %s883_s21  ;;  %300 = vrot.lane.b32.xlu0 %v296_v40, %s883_s21  ;;  %v362_v50 = vrot.slane %v356_v42, 1  ;;  %v363_v53 = vrot.slane %v357_v43, 1 }
  0x8c   : > { %v314_v52 = vpop.permute.xlu0 %313  ;;  %v365_v54 = vrot.slane %v358_v44, 1  ;;  %v381_v55 = vpop.permute.xlu1 %380 }
  0x8d   : > { %v316_v58 = vmul.f32 %v314_v52, %v1000_v16  ;;  %v317_v59 = vmul.f32 %v314_v52, %v1002_v17  ;;  %v383_v60 = vmul.f32 %v381_v55, %v1000_v16  ;;  %v384_v61 = vmul.f32 %v381_v55, %v1002_v17 }
  0x8e   : > { %v385_v62 = vmul.f32 %v381_v55, %v1004_v18  ;;  %v366_v7 = vsel %vm338_vm0, %v363_v53, %v365_v54  ;;  %v364_v8 = vsel %vm338_vm0, %v362_v50, %v363_v53 }
  0x8f   : > { %322 = vrot.lane.b32.xlu1 %v317_v59, %s884_s30  ;;  %320 = vrot.lane.b32.xlu0 %v316_v58, %s884_s30  ;;  %v389_v3 = vrot.slane %v383_v60, 1  ;;  %v390_v4 = vrot.slane %v384_v61, 1 }
  0x90   : > { %v392_v6 = vrot.slane %v385_v62, 1  ;;  %v428_v9 = vpop.permute.xlu0 %427  ;;  %v455_v10 = vpop.permute.xlu1 %454 }
  0x91   : > { %v430_v11 = vmul.f32 %v428_v9, %v1000_v16  ;;  %v431_v12 = vmul.f32 %v428_v9, %v1002_v17  ;;  %v432_v13 = vmul.f32 %v428_v9, %v1004_v18  ;;  %v391_v14 = vsel %vm338_vm0, %v389_v3, %v390_v4 }
  0x92   : > { %v393_v15 = vsel %vm338_vm0, %v390_v4, %v392_v6  ;;  %v457_v19 = vmul.f32 %v455_v10, %v1000_v16  ;;  %v458_v20 = vmul.f32 %v455_v10, %v1002_v17  ;;  %v459_v24 = vmul.f32 %v455_v10, %v1004_v18 }
  0x93   : > { %369 = vrot.lane.b32.xlu1 %v366_v7, %s883_s21  ;;  %367 = vrot.lane.b32.xlu0 %v364_v8, %s883_s21  ;;  %v436_v21 = vrot.slane %v430_v11, 2  ;;  %v437_v22 = vrot.slane %v431_v12, 2  ;;  %v439_v23 = vrot.slane %v432_v13, 2  ;;  %v282_v18 = vsub.s32 0, %v967_v1 }
  0x94   : > { %v463_v25 = vrot.slane %v457_v19, 2  ;;  %v464_v26 = vrot.slane %v458_v20, 2  ;;  %v466_v27 = vrot.slane %v459_v24, 2 }
  0x95   : > { %v440_v30 = vsel %vm412_vm1, %v437_v22, %v439_v23  ;;  %v438_v31 = vsel %vm412_vm1, %v436_v21, %v437_v22  ;;  %v283_v34 = vrot.slane %v972_v2, %v282_v18 }
  0x96   : > { %v467_v32 = vsel %vm412_vm1, %v464_v26, %v466_v27  ;;  %v465_v33 = vsel %vm412_vm1, %v463_v25, %v464_v26 }
  0x97   : > { %396 = vrot.lane.b32.xlu1 %v393_v15, %s884_s30  ;;  %394 = vrot.lane.b32.xlu0 %v391_v14, %s884_s30  ;;  %v285_v35 = vmul.f32 %v283_v34, %v1002_v17  ;;  %v284_v36 = vmul.f32 %v283_v34, %v1000_v16 }
  0x9b   : > { %443 = vrot.lane.b32.xlu1 %v440_v30, %s883_s21  ;;  %441 = vrot.lane.b32.xlu0 %v438_v31, %s883_s21  ;;  %s801_s21 = scalar_lea.vmem %s1096_s9, 256 }
  0x9c   : > { %p802_p12 = scmp.ne.s32.totalorder %s1096_s9, %s801_s21  ;;  %p809_p2 = scmp.lt.s32.totalorder %s807_s24, %s801_s21 }
  0x9e   : > { %p803_p13 = pnand %p802_p12, %p952_p4  ;;  %p810_p3 = por %p809_p2, %p808_p1 }
  0x9f   : > { %470 = vrot.lane.b32.xlu1 %v467_v32, %s884_s30  ;;  %468 = vrot.lane.b32.xlu0 %v465_v33, %s884_s30 }
  0xa0   : > { %p804_p0 = pneg %p803_p13 }
  0xa2   : > { %p811_p5 = pnand %p810_p3, %p804_p0 }
  0xfd   : > { %v303_v37 = vpop.permute.xlu1 %302  ;;  %v301_v38 = vpop.permute.xlu0 %300 }
  0xfe   : > { %v307_v39 = vadd.f32 %v303_v37, %v285_v35  ;;  %v306_v40 = vadd.f32 %v301_v38, %v284_v36 }
 0x101   : > { %v323_v41 = vpop.permute.xlu1 %322  ;;  %v321_v42 = vpop.permute.xlu0 %320 }
 0x102   : > { %v327_v43 = vadd.f32 %v323_v41, %v307_v39  ;;  %v326_v44 = vadd.f32 %v321_v42, %v306_v40 }
 0x104   : > { %v347_v45 = vadd.f32 %v1016_v28, %v327_v43  ;;  %v346_v46 = vadd.f32 %v1019_v29, %v326_v44 }
 0x105   : > { %v370_v47 = vpop.permute.xlu1 %369  ;;  %v368_v1 = vpop.permute.xlu0 %367 }
 0x106   : > { %v374_v48 = vadd.f32 %v370_v47, %v347_v45  ;;  %v373_v2 = vadd.f32 %v368_v1, %v346_v46 }
 0x109   : > { %v397_v49 = vpop.permute.xlu1 %396  ;;  %v395_v17 = vpop.permute.xlu0 %394 }
 0x10a   : > { %v401_v16 = vadd.f32 %v397_v49, %v374_v48  ;;  %v400_v50 = vadd.f32 %v395_v17, %v373_v2 }
 0x10c   : > { %v421_v51 = vadd.f32 %v1046_v56, %v401_v16  ;;  %v420_v52 = vadd.f32 %v1049_v57, %v400_v50 }
 0x10d   : > { %v444_v53 = vpop.permute.xlu1 %443  ;;  %v442_v54 = vpop.permute.xlu0 %441 }
 0x10e   : > { %v448_v55 = vadd.f32 %v444_v53, %v421_v51  ;;  %v447_v28 = vadd.f32 %v442_v54, %v420_v52 }
 0x111   : > { %v471_v58 = vpop.permute.xlu1 %470  ;;  %v469_v29 = vpop.permute.xlu0 %468 }
 0x112   : > { %v475_v59 = vadd.f32 %v471_v58, %v448_v55  ;;  %v474_v60 = vadd.f32 %v469_v29, %v447_v28 }
 0x114   : > { %721 = vmatprep.mubr.msk.f32.mxu0 %vm484_vm2, %v474_v60 }
 0x115   : > { %722 = vmatmul.mubr.msk.f32.vlgmr.msra.gmra.mrb[0].mxu0 %vm484_vm2, %v475_v59 }
 0x1e8   : > { %v723_v56 = vpop.f32.mrb[0].mxu0 }
 0x1e9   : > { %567 = vst [vmem:[%s248_s8 + $0x8] sm:$0xff] %v723_v56  ;;  %v557_v57 = vpop.f32.mrb[1].mxu0 }
 0x1ea   : > { %566 = vst [vmem:[%s248_s8] sm:$0xff] %v557_v57 }
 0x1eb   : > { %814 = shalt.err (!%p811_p5)
}
 0x1ec   : > { %s815_s26 = scalar_lea.hbm %s1101_s13, 256  ;;  %s819_s5 = scalar_lea.hbm %s1154_s4, 512 }
 0x1ed   : > { %p816_p6 = scmp.ne.s32.totalorder %s1101_s13, %s815_s26  ;;  %p820_p10 = scmp.lt.u32.totalorder %s1101_s13, %s1154_s4 }
 0x1ee   : > { %p821_p11 = scmp.lt.u32.totalorder %s819_s5, %s815_s26  ;;  %p823_p13 = scmp.lt.u32.totalorder %s815_s26, %s1101_s13 }
 0x1ef   : > { %p817_p7 = pnand %p816_p6, %p952_p4 }
 0x1f0   : > { %p822_p12 = por %p821_p11, %p820_p10 }
 0x1f1   : > { %p818_p9 = pneg %p817_p7 }
 0x1f2   : > { %p824_p0 = por %p823_p13, %p822_p12 }
 0x1f4   : > { %p825_p1 = pnand %p824_p0, %p818_p9 }
 0x1f6   : > { %828 = shalt.err (!%p825_p1)
}
 0x1f7   : > { %s886_s10 = smov 128  }
 0x1f8   : > { %741 = dma.vmem_to_hbm [thread:$0]  (%p952_p4), %s1096_s9, 256, %s1101_s13, %s1103_s14, %s886_s10, %s886_s10, %s882_s6  }
 0x1f9 PF: > { %p747_p2 = scmp.ge.s32.totalorder %s879_s20, 2  ;;  %s599_s11 = sand.u32 1, %s859_s15  }
 0x1fa   : > { %s600_s12 = scalar_lea.sflag [#allocation3], %s599_s11 }
 0x1fb   : > { %p744_p3 = pnand %p747_p2, %p959_p8 }
 0x1fd   : > { %854 = dma.done.wait (!%p744_p3), %s600_s12, 256  }
 0x1fe   : > { %856 = vsyncadd (!%p744_p3), %s600_s12, 4294967040  ;;  %s17_s20 = sadd.s32 1, %s879_s20   ;;  %s1157_s15 = smov %s863_s16 }
 0x1ff   : > { %p14_p5 = scmp.ge.s32.totalorder %s17_s20, 4   ;;  %s1158_s16 = smov %s867_s17 }
 0x200   : > { %s1159_s17 = smov %s965_s28  ;;  %s1160_s18 = smov %s875_s19 }
 0x201   : > { %s1161_s19 = smov %s1163_s23  ;;  %16 = sbr.rel (!%p14_p5) target bundleno = 4 (0x4), region = 74 }
 0x208   :  { %605 = vsyncpa [#allocation3], 1 }
 0x209   :  { %607 = vsyncpa [#allocation3 + $0x1], 1 }

</bundles_post_ra>
